<compile_context>
chip_gen: v6e
topology: v6e:2x2x1
jax: 0.10.0
libtpu: 0.0.40
codegen_flags: <defaults>
</compile_context>

<pallas_src>
import functools

import jax
import jax.numpy as jnp
from jax.experimental import pallas as pl
from jax.experimental.pallas import tpu as pltpu


def _round_up(n, m):
    return (n + m - 1) // m * m


def _avg_pool_kernel(x_ref, o_ref, *, pool_size, strides, fold_scale, inv_pool):
    # x_ref: (rt, lt_in)  rows = folded batch*channels, lanes = input length
    # o_ref: (rt, lt_out) pooled output tile
    lt_in = x_ref.shape[-1]
    lt_out = o_ref.shape[-1]
    # Window-selection matrix (compile-time constant): column j selects input
    # columns [j*strides, j*strides + pool_size). Identical for every tile
    # because lt_in = strides * lt_out keeps tile boundaries on window starts.
    row = jax.lax.broadcasted_iota(jnp.int32, (lt_in, lt_out), 0)
    col = jax.lax.broadcasted_iota(jnp.int32, (lt_in, lt_out), 1)
    off = row - col * strides
    hit = (off >= 0) & (off < pool_size)
    one = jnp.asarray(inv_pool if fold_scale else 1.0, dtype=x_ref.dtype)
    zero = jnp.asarray(0.0, dtype=x_ref.dtype)
    sel = jnp.where(hit, one, zero)
    acc = jnp.dot(x_ref[...], sel, preferred_element_type=jnp.float32)
    if not fold_scale:
        acc = acc * inv_pool
    o_ref[...] = acc.astype(o_ref.dtype)


def _row_tiling(r, sub, lt_in, lt_out, itemsize):
    """Pick (row_tile, padded_row_count).

    Largest tile whose row-padding waste is <=12.5%, capped so the
    double-buffered VMEM footprint stays ~24 MiB (safe on v7x's 64 MiB
    physical VMEM) and so large problems keep >=2 row tiles for megacore."""
    r8 = _round_up(max(r, 1), sub)
    budget = 24 * 1024 * 1024                       # double-buffered bytes target
    row_bytes = 2 * (lt_in + lt_out) * itemsize     # in + out, double-buffered
    cap = max(sub, (budget // row_bytes) // sub * sub)
    limit = min(2048, cap, r8)
    if r8 >= 1024:
        limit = min(limit, r8 // 2)                 # >=2 row tiles on big shapes
    for rt in (2048, 1024, 512, 256, 128, 64, 32, 16, 8):
        if rt > limit or rt < sub:
            continue
        r_pad = _round_up(r8, rt)
        if (r_pad - r8) * 8 <= r8:                  # <=12.5% padded rows
            return rt, r_pad
    return sub, r8


def avg_pool(x, pool_size=2, strides=2):
    """AvgPool1d forward: x (B, C, L) -> (B, C, (L - pool_size)//strides + 1)."""
    assert x.ndim == 3
    B, C, L = x.shape
    assert L >= pool_size
    # TODO(synk): overlapping windows (pool_size > strides) would need halo'd
    # input blocks; the original module only ever uses pool_size == strides.
    assert pool_size <= strides

    l_out = (L - pool_size) // strides + 1
    r = B * C
    itemsize = jnp.dtype(x.dtype).itemsize
    sub = {4: 8, 2: 16, 1: 32}.get(itemsize, 8)     # dtype-aware sublane packing

    lt_out = 128                                    # lane-dense output stores
    lt_in = lt_out * strides
    l_out_pad = _round_up(l_out, lt_out)
    l_in_pad = l_out_pad * strides

    rt, r_pad = _row_tiling(r, sub, lt_in, lt_out, itemsize)

    x2 = x.reshape(r, L)
    if L > l_in_pad:
        x2 = x2[:, :l_in_pad]                       # PyTorch drops the uncovered tail
    if r_pad > r or l_in_pad > x2.shape[1]:
        # Zero padding never contaminates valid outputs: valid windows only
        # touch columns < (l_out-1)*strides + pool_size <= L, and padded
        # rows/columns are sliced off after the call.
        x2 = jnp.pad(x2, ((0, r_pad - r), (0, l_in_pad - x2.shape[1])))

    fold_scale = (pool_size & (pool_size - 1)) == 0  # 1/pool_size exact (pow2)
    inv_pool = 1.0 / pool_size

    grid = (r_pad // rt, l_out_pad // lt_out)
    cost = pl.CostEstimate(
        flops=2 * r_pad * l_out_pad * lt_in,
        transcendentals=0,
        bytes_accessed=int((r_pad * l_in_pad + r_pad * l_out_pad) * itemsize),
    )

    out = pl.pallas_call(
        functools.partial(_avg_pool_kernel, pool_size=pool_size, strides=strides,
                          fold_scale=fold_scale, inv_pool=inv_pool),
        out_shape=jax.ShapeDtypeStruct((r_pad, l_out_pad), x.dtype),
        grid_spec=pltpu.PrefetchScalarGridSpec(
            num_scalar_prefetch=0,
            grid=grid,
            in_specs=[pl.BlockSpec((rt, lt_in), lambda i, j: (i, j))],
            out_specs=pl.BlockSpec((rt, lt_out), lambda i, j: (i, j)),
        ),
        compiler_params=pltpu.CompilerParams(
            dimension_semantics=("parallel", "parallel"),
            vmem_limit_bytes=32 * 1024 * 1024,
        ),
        cost_estimate=cost,
    )(x2)
    return out[:r, :l_out].reshape(B, C, l_out)


def avg_pool_reference(x, pool_size=2, strides=2):
    """Pure-JAX reference matching nn.AvgPool1d(pool_size, stride=strides)."""
    s = jax.lax.reduce_window(
        x,
        jnp.float32(0.0),
        jax.lax.add,
        window_dimensions=(1, 1, pool_size),
        window_strides=(1, 1, strides),
        padding="VALID",
    )
    return s / pool_size


if __name__ == "__main__":
    # Small shapes consistent with the module's forward: (batch, channels, length)
    B, C, L = 2, 4, 16
    pool_size, strides = 2, 2

    key = jax.random.PRNGKey(0)
    x = jax.random.normal(key, (B, C, L), dtype=jnp.float32)

    out = avg_pool(x, pool_size=pool_size, strides=strides)
    out = jax.block_until_ready(out)

    ref = avg_pool_reference(x, pool_size, strides)
    assert out.shape == (B, C, (L - pool_size) // strides + 1)
    assert jnp.allclose(out, ref, atol=1e-6, rtol=1e-6), "mismatch vs reference"

    print("KERNEL_OK")
</pallas_src>

<mosaic_0001>
module attributes {stable_mosaic.version = 11 : i64} {
  func.func @_avg_pool_kernel(%arg0: i32, %arg1: i32, %arg2: memref<8x256xf32, #tpu.memory_space<vmem>>, %arg3: memref<8x128xf32, #tpu.memory_space<vmem>>) attributes {dimension_semantics = [#tpu.dimension_semantics<parallel>, #tpu.dimension_semantics<parallel>], iteration_bounds = array<i64: 1, 1>, scalar_prefetch = 0 : i64, scratch_operands = 0 : i64, tpu.core_type = #tpu.core_type<tc>, window_params = [{transform_indices = @transform_0, window_bounds = array<i64: 8, 256>}, {transform_indices = @transform_1, window_bounds = array<i64: 8, 128>}]} {
    %0 = tpu.iota {dimensions = array<i32: 0>} : vector<256x128xi32>
    %1 = tpu.iota {dimensions = array<i32: 1>} : vector<256x128xi32>
    %c2_i32 = arith.constant 2 : i32
    %2 = vector.broadcast %c2_i32 : i32 to vector<256x128xi32>
    %3 = arith.muli %1, %2 : vector<256x128xi32>
    %4 = arith.subi %0, %3 : vector<256x128xi32>
    %c0_i32 = arith.constant 0 : i32
    %5 = vector.broadcast %c0_i32 : i32 to vector<256x128xi32>
    %6 = arith.cmpi sge, %4, %5 : vector<256x128xi32>
    %c2_i32_0 = arith.constant 2 : i32
    %7 = vector.broadcast %c2_i32_0 : i32 to vector<256x128xi32>
    %8 = arith.cmpi slt, %4, %7 : vector<256x128xi32>
    %9 = arith.andi %6, %8 : vector<256x128xi1>
    %cst = arith.constant 5.000000e-01 : f32
    %cst_1 = arith.constant 0.000000e+00 : f32
    %10 = vector.broadcast %cst : f32 to vector<256x128xf32>
    %11 = vector.broadcast %cst_1 : f32 to vector<256x128xf32>
    %12 = arith.select %9, %10, %11 : vector<256x128xi1>, vector<256x128xf32>
    %c0 = arith.constant 0 : index
    %c0_2 = arith.constant 0 : index
    %13 = vector.load %arg2[%c0, %c0_2] : memref<8x256xf32, #tpu.memory_space<vmem>>, vector<8x256xf32>
    %cst_3 = arith.constant dense<0.000000e+00> : vector<8x128xf32>
    %14 = tpu.matmul %13, %12, %cst_3 {dimension_numbers = #tpu.dot_dimension_numbers<[1], [0], [0], [1], [0, 0, 1, 1], [], []>} : vector<8x256xf32>, vector<256x128xf32>, vector<8x128xf32> -> vector<8x128xf32>
    %c0_4 = arith.constant 0 : index
    %c0_5 = arith.constant 0 : index
    %15 = vector.load %arg3[%c0_4, %c0_5] : memref<8x128xf32, #tpu.memory_space<vmem>>, vector<8x128xf32>
    tpu.vector_store %arg3[%c0_4, %c0_5], %14 {strides = array<i32>} : memref<8x128xf32, #tpu.memory_space<vmem>>, vector<8x128xf32>,
    return
  }
  func.func @transform_0(%arg0: i32, %arg1: i32) -> (i32, i32) {
    %c0_i32 = arith.constant 0 : i32
    return %arg0, %arg1 : i32, i32
  }
  func.func @transform_1(%arg0: i32, %arg1: i32) -> (i32, i32) {
    %c0_i32 = arith.constant 0 : i32
    return %arg0, %arg1 : i32, i32
  }
}

</mosaic_0001>

<bundles_post_ra>
// kernel: tpu_custom_call.1
= control target key start
LH: loop header
LB: loop body
LE: loop exit
PB: predicated region body
PF: predicated region fallthrough
CT: control target
= control target key end

     0   :  { %6 = vsyncpa [#allocation3], 0  ;;  %s569_s0 = inlined_call_operand.hbm [shape: f32[8,256], index: 0, kind: input, shape index: {}]   ;;  %s570_s1 = inlined_call_operand.hbm [shape: f32[8,128], index: 1, kind: output, shape index: {}]  }
   0x1   :  { %7 = vsyncpa [#allocation4], 0  ;;  %s419_s6 = smov [#allocation2]  }
   0x2   :  { %s14_s7 = sshll.u32 %s419_s6, 4  ;;  %s15_s7 = int_to_ptr.vmem [resolvable:$true] %s14_s7 }
   0x3   :  { %s383_s8 = scalar_lea.vmem %s15_s7, 256  ;;  %p388_p1 = scmp.lt.s32.totalorder %s15_s7, %s15_s7 }
   0x4   :  { %p384_p0 = scmp.ne.s32.totalorder %s15_s7, %s383_s8  ;;  %p389_p2 = scmp.lt.s32.totalorder %s383_s8, %s383_s8 }
   0x6   :  { %p390_p3 = por %p389_p2, %p388_p1 }
   0x8   :  { %p391_p4 = pnand %p390_p3, %p384_p0 }
   0xa   :  { %394 = shalt.err (!%p391_p4)
}
   0xb   :  { %17 = dma.hbm_to_vmem [thread:$0]  %s569_s0, 256, %s15_s7, [#allocation3]   ;;  %v21_v0 = vlaneseq }
   0xc   :  { %415 = dma.done.wait [#allocation3], 256  }
   0xd   :  { %416 = vsyncadd [#allocation3], 4294967040  ;;  %v435_v1 = vshrl.u32 %v21_v0, 7  ;;  %v55_v2 = vand.u32 127, %v21_v0  ;;  %v218_v19 = vld [vmem:[#allocation2 + $0x8] sm:$0xff]  ;;  %v420_v20 = vmov 0.5  }
   0xe   :  { %283 = vmatprep.mubr.f32.mxu0 %v218_v19  ;;  %s421_s0 = smov [#allocation5]  }
   0xf   :  { %v53_v3 = vadd.s32 248, %v435_v1  ;;  %v438_v4 = vmul.u32 2, %v55_v2  ;;  %v37_v5 = vadd.s32 120, %v435_v1  ;;  %v52_v6 = vadd.s32 240, %v435_v1  ;;  %s296_s11 = sshll.u32 %s421_s0, 4  ;;  %s297_s11 = int_to_ptr.vmem [resolvable:$true] %s296_s11 }
  0x10   :  { %v36_v7 = vadd.s32 112, %v435_v1  ;;  %v51_v8 = vadd.s32 232, %v435_v1  ;;  %v35_v9 = vadd.s32 104, %v435_v1  ;;  %v50_v10 = vadd.s32 224, %v435_v1  ;;  %s395_s12 = scalar_lea.vmem %s297_s11, 128  ;;  %p400_p6 = scmp.lt.s32.totalorder %s297_s11, %s297_s11 }
  0x11   :  { %v88_v11 = vsub.s32 %v53_v3, %v438_v4  ;;  %v72_v12 = vsub.s32 %v37_v5, %v438_v4  ;;  %v87_v13 = vsub.s32 %v52_v6, %v438_v4  ;;  %v34_v14 = vadd.s32 96, %v435_v1  ;;  %p396_p5 = scmp.ne.s32.totalorder %s297_s11, %s395_s12  ;;  %p401_p7 = scmp.lt.s32.totalorder %s395_s12, %s395_s12 }
  0x12   :  { %v71_v15 = vsub.s32 %v36_v7, %v438_v4  ;;  %v86_v16 = vsub.s32 %v51_v8, %v438_v4  ;;  %v70_v17 = vsub.s32 %v35_v9, %v438_v4  ;;  %v85_v18 = vsub.s32 %v50_v10, %v438_v4 }
  0x13   :  { %vm120_vm0 = vcmp.ge.s32.totalorder %v88_v11, 0  ;;  %vm152_vm1 = vcmp.lt.s32.totalorder %v88_v11, 2  ;;  %vm104_vm2 = vcmp.ge.s32.totalorder %v72_v12, 0  ;;  %vm136_vm3 = vcmp.lt.s32.totalorder %v72_v12, 2  ;;  %p402_p8 = por %p401_p7, %p400_p6 }
  0x14   :  { %vm184_vm4 = vmand %vm120_vm0, %vm152_vm1  ;;  %vm119_vm5 = vcmp.ge.s32.totalorder %v87_v13, 0  ;;  %vm151_vm6 = vcmp.lt.s32.totalorder %v87_v13, 2  ;;  %vm103_vm7 = vcmp.ge.s32.totalorder %v71_v15, 0  ;;  %vm135_vm8 = vcmp.lt.s32.totalorder %v71_v15, 2 }
  0x15   :  { %337 = vmatprep.subr.msk.mxu0 %vm184_vm4, %v420_v20  ;;  %vm168_vm9 = vmand %vm104_vm2, %vm136_vm3  ;;  %vm118_vm10 = vcmp.ge.s32.totalorder %v86_v16, 0  ;;  %vm150_vm11 = vcmp.lt.s32.totalorder %v86_v16, 2  ;;  %vm102_vm12 = vcmp.ge.s32.totalorder %v70_v17, 0  ;;  %vm134_vm13 = vcmp.lt.s32.totalorder %v70_v17, 2  ;;  %p403_p9 = pnand %p402_p8, %p396_p5 }
  0x16   :  { %338 = vmatpush3.msk.msra.mxu0 %vm168_vm9, %v420_v20  ;;  %vm183_vm14 = vmand %vm119_vm5, %vm151_vm6  ;;  %vm117_vm15 = vcmp.ge.s32.totalorder %v85_v18, 0  ;;  %vm149_vm0 = vcmp.lt.s32.totalorder %v85_v18, 2  ;;  %v69_v21 = vsub.s32 %v34_v14, %v438_v4  ;;  %v49_v22 = vadd.s32 216, %v435_v1 }
  0x17   :  { %339 = vmatprep.subr.msk.mxu0 %vm183_vm14, %v420_v20  ;;  %vm167_vm1 = vmand %vm103_vm7, %vm135_vm8  ;;  %v33_v23 = vadd.s32 88, %v435_v1  ;;  %v48_v24 = vadd.s32 208, %v435_v1  ;;  %v32_v25 = vadd.s32 80, %v435_v1  ;;  %v47_v26 = vadd.s32 200, %v435_v1 }
  0x18   :  { %340 = vmatpush3.msk.msra.mxu0 %vm167_vm1, %v420_v20  ;;  %vm182_vm2 = vmand %vm118_vm10, %vm150_vm11  ;;  %vm101_vm3 = vcmp.ge.s32.totalorder %v69_v21, 0  ;;  %vm133_vm4 = vcmp.lt.s32.totalorder %v69_v21, 2  ;;  %v84_v27 = vsub.s32 %v49_v22, %v438_v4  ;;  %v31_v28 = vadd.s32 72, %v435_v1 }
  0x19   :  { %341 = vmatprep.subr.msk.mxu0 %vm182_vm2, %v420_v20  ;;  %vm166_vm5 = vmand %vm102_vm12, %vm134_vm13  ;;  %v68_v29 = vsub.s32 %v33_v23, %v438_v4  ;;  %v83_v30 = vsub.s32 %v48_v24, %v438_v4  ;;  %v67_v31 = vsub.s32 %v32_v25, %v438_v4  ;;  %v82_v32 = vsub.s32 %v47_v26, %v438_v4 }
  0x1a   :  { %342 = vmatpush3.msk.msra.mxu0 %vm166_vm5, %v420_v20  ;;  %vm181_vm6 = vmand %vm117_vm15, %vm149_vm0  ;;  %vm116_vm7 = vcmp.ge.s32.totalorder %v84_v27, 0  ;;  %vm148_vm8 = vcmp.lt.s32.totalorder %v84_v27, 2  ;;  %v66_v33 = vsub.s32 %v31_v28, %v438_v4  ;;  %v46_v34 = vadd.s32 192, %v435_v1 }
  0x1b   :  { %343 = vmatprep.subr.msk.mxu0 %vm181_vm6, %v420_v20  ;;  %vm165_vm9 = vmand %vm101_vm3, %vm133_vm4  ;;  %vm100_vm10 = vcmp.ge.s32.totalorder %v68_v29, 0  ;;  %vm132_vm11 = vcmp.lt.s32.totalorder %v68_v29, 2  ;;  %vm115_vm12 = vcmp.ge.s32.totalorder %v83_v30, 0  ;;  %vm147_vm13 = vcmp.lt.s32.totalorder %v83_v30, 2 }
  0x1c   :  { %344 = vmatpush3.msk.msra.mxu0 %vm165_vm9, %v420_v20  ;;  %vm180_vm14 = vmand %vm116_vm7, %vm148_vm8  ;;  %vm99_vm1 = vcmp.ge.s32.totalorder %v67_v31, 0  ;;  %vm131_vm15 = vcmp.lt.s32.totalorder %v67_v31, 2  ;;  %vm114_vm0 = vcmp.ge.s32.totalorder %v82_v32, 0  ;;  %vm146_vm2 = vcmp.lt.s32.totalorder %v82_v32, 2 }
  0x1d   :  { %345 = vmatprep.subr.msk.mxu0 %vm180_vm14, %v420_v20  ;;  %vm164_vm5 = vmand %vm100_vm10, %vm132_vm11  ;;  %vm98_vm6 = vcmp.ge.s32.totalorder %v66_v33, 0  ;;  %vm130_vm3 = vcmp.lt.s32.totalorder %v66_v33, 2  ;;  %v81_v35 = vsub.s32 %v46_v34, %v438_v4  ;;  %v30_v36 = vadd.s32 64, %v435_v1 }
  0x1e   :  { %346 = vmatpush3.msk.msra.mxu0 %vm164_vm5, %v420_v20  ;;  %vm179_vm4 = vmand %vm115_vm12, %vm147_vm13  ;;  %v45_v37 = vadd.s32 184, %v435_v1  ;;  %v29_v38 = vadd.s32 56, %v435_v1  ;;  %v44_v39 = vadd.s32 176, %v435_v1  ;;  %v28_v40 = vadd.s32 48, %v435_v1 }
  0x1f   :  { %347 = vmatprep.subr.msk.mxu0 %vm179_vm4, %v420_v20  ;;  %vm163_vm7 = vmand %vm99_vm1, %vm131_vm15  ;;  %vm113_vm8 = vcmp.ge.s32.totalorder %v81_v35, 0  ;;  %vm145_vm9 = vcmp.lt.s32.totalorder %v81_v35, 2  ;;  %v65_v41 = vsub.s32 %v30_v36, %v438_v4  ;;  %v43_v42 = vadd.s32 168, %v435_v1 }
  0x20   :  { %348 = vmatpush3.msk.msra.mxu0 %vm163_vm7, %v420_v20  ;;  %vm178_vm10 = vmand %vm114_vm0, %vm146_vm2  ;;  %v80_v43 = vsub.s32 %v45_v37, %v438_v4  ;;  %v64_v44 = vsub.s32 %v29_v38, %v438_v4  ;;  %v79_v45 = vsub.s32 %v44_v39, %v438_v4  ;;  %v63_v46 = vsub.s32 %v28_v40, %v438_v4 }
  0x21   :  { %349 = vmatprep.subr.msk.mxu0 %vm178_vm10, %v420_v20  ;;  %vm162_vm11 = vmand %vm98_vm6, %vm130_vm3  ;;  %vm97_vm12 = vcmp.ge.s32.totalorder %v65_v41, 0  ;;  %vm129_vm13 = vcmp.lt.s32.totalorder %v65_v41, 2  ;;  %v78_v47 = vsub.s32 %v43_v42, %v438_v4  ;;  %v27_v48 = vadd.s32 40, %v435_v1 }
  0x22   :  { %350 = vmatpush3.msk.msra.mxu0 %vm162_vm11, %v420_v20  ;;  %vm177_vm14 = vmand %vm113_vm8, %vm145_vm9  ;;  %vm112_vm1 = vcmp.ge.s32.totalorder %v80_v43, 0  ;;  %vm144_vm15 = vcmp.lt.s32.totalorder %v80_v43, 2  ;;  %vm96_vm0 = vcmp.ge.s32.totalorder %v64_v44, 0  ;;  %vm128_vm2 = vcmp.lt.s32.totalorder %v64_v44, 2 }
  0x23   :  { %351 = vmatprep.subr.msk.mxu0 %vm177_vm14, %v420_v20  ;;  %vm161_vm5 = vmand %vm97_vm12, %vm129_vm13  ;;  %vm111_vm4 = vcmp.ge.s32.totalorder %v79_v45, 0  ;;  %vm143_vm6 = vcmp.lt.s32.totalorder %v79_v45, 2  ;;  %vm95_vm3 = vcmp.ge.s32.totalorder %v63_v46, 0  ;;  %vm127_vm7 = vcmp.lt.s32.totalorder %v63_v46, 2 }
  0x24   :  { %352 = vmatpush3.msk.msra.mxu0 %vm161_vm5, %v420_v20  ;;  %vm176_vm10 = vmand %vm112_vm1, %vm144_vm15  ;;  %vm110_vm11 = vcmp.ge.s32.totalorder %v78_v47, 0  ;;  %vm142_vm8 = vcmp.lt.s32.totalorder %v78_v47, 2  ;;  %v62_v49 = vsub.s32 %v27_v48, %v438_v4  ;;  %v42_v50 = vadd.s32 160, %v435_v1 }
  0x25   :  { %353 = vmatprep.subr.msk.mxu0 %vm176_vm10, %v420_v20  ;;  %vm160_vm9 = vmand %vm96_vm0, %vm128_vm2  ;;  %v26_v51 = vadd.s32 32, %v435_v1  ;;  %v41_v52 = vadd.s32 152, %v435_v1  ;;  %v25_v53 = vadd.s32 24, %v435_v1  ;;  %v40_v54 = vadd.s32 144, %v435_v1 }
  0x26   :  { %354 = vmatpush3.msk.msra.mxu0 %vm160_vm9, %v420_v20  ;;  %vm175_vm12 = vmand %vm111_vm4, %vm143_vm6  ;;  %vm94_vm13 = vcmp.ge.s32.totalorder %v62_v49, 0  ;;  %vm126_vm14 = vcmp.lt.s32.totalorder %v62_v49, 2  ;;  %v77_v55 = vsub.s32 %v42_v50, %v438_v4  ;;  %v24_v56 = vadd.s32 16, %v435_v1 }
  0x27   :  { %355 = vmatprep.subr.msk.mxu0 %vm175_vm12, %v420_v20  ;;  %vm159_vm1 = vmand %vm95_vm3, %vm127_vm7  ;;  %v61_v57 = vsub.s32 %v26_v51, %v438_v4  ;;  %v76_v58 = vsub.s32 %v41_v52, %v438_v4  ;;  %v60_v59 = vsub.s32 %v25_v53, %v438_v4  ;;  %v75_v60 = vsub.s32 %v40_v54, %v438_v4 }
  0x28   :  { %356 = vmatpush3.msk.msra.mxu0 %vm159_vm1, %v420_v20  ;;  %vm174_vm15 = vmand %vm110_vm11, %vm142_vm8  ;;  %vm109_vm0 = vcmp.ge.s32.totalorder %v77_v55, 0  ;;  %vm141_vm2 = vcmp.lt.s32.totalorder %v77_v55, 2  ;;  %v59_v61 = vsub.s32 %v24_v56, %v438_v4  ;;  %v39_v62 = vadd.s32 136, %v435_v1 }
  0x29   :  { %357 = vmatprep.subr.msk.mxu0 %vm174_vm15, %v420_v20  ;;  %vm158_vm5 = vmand %vm94_vm13, %vm126_vm14  ;;  %vm93_vm4 = vcmp.ge.s32.totalorder %v61_v57, 0  ;;  %vm125_vm6 = vcmp.lt.s32.totalorder %v61_v57, 2  ;;  %vm108_vm3 = vcmp.ge.s32.totalorder %v76_v58, 0  ;;  %vm140_vm7 = vcmp.lt.s32.totalorder %v76_v58, 2 }
  0x2a   :  { %358 = vmatpush3.msk.msra.mxu0 %vm158_vm5, %v420_v20  ;;  %vm173_vm10 = vmand %vm109_vm0, %vm141_vm2  ;;  %vm92_vm9 = vcmp.ge.s32.totalorder %v60_v59, 0  ;;  %vm124_vm11 = vcmp.lt.s32.totalorder %v60_v59, 2  ;;  %vm107_vm12 = vcmp.ge.s32.totalorder %v75_v60, 0  ;;  %vm139_vm1 = vcmp.lt.s32.totalorder %v75_v60, 2 }
  0x2b   :  { %359 = vmatprep.subr.msk.mxu0 %vm173_vm10, %v420_v20  ;;  %vm157_vm8 = vmand %vm93_vm4, %vm125_vm6  ;;  %v74_v63 = vsub.s32 %v39_v62, %v438_v4  ;;  %v23_v0 = vadd.s32 8, %v435_v1  ;;  %vm91_vm14 = vcmp.ge.s32.totalorder %v59_v61, 0  ;;  %vm123_vm15 = vcmp.lt.s32.totalorder %v59_v61, 2 }
  0x2c   :  { %360 = vmatpush3.msk.msra.mxu0 %vm157_vm8, %v420_v20  ;;  %vm172_vm13 = vmand %vm108_vm3, %vm140_vm7  ;;  %v38_v2 = vadd.s32 128, %v435_v1  ;;  %v57_v3 = vsub.s32 %v435_v1, %v438_v4  ;;  %v217_v1 = vld [vmem:[#allocation2] sm:$0xff] }
  0x2d   :  { %361 = vmatprep.subr.msk.mxu0 %vm172_vm13, %v420_v20  ;;  %vm156_vm0 = vmand %vm92_vm9, %vm124_vm11  ;;  %vm106_vm2 = vcmp.ge.s32.totalorder %v74_v63, 0  ;;  %vm138_vm5 = vcmp.lt.s32.totalorder %v74_v63, 2  ;;  %v58_v5 = vsub.s32 %v23_v0, %v438_v4 }
  0x2e   :  { %362 = vmatpush3.msk.msra.mxu0 %vm156_vm0, %v420_v20  ;;  %vm171_vm4 = vmand %vm107_vm12, %vm139_vm1  ;;  %v73_v6 = vsub.s32 %v38_v2, %v438_v4  ;;  %vm89_vm8 = vcmp.ge.s32.totalorder %v57_v3, 0  ;;  %vm121_vm13 = vcmp.lt.s32.totalorder %v57_v3, 2 }
  0x2f   :  { %363 = vmatprep.subr.msk.mxu0 %vm171_vm4, %v420_v20  ;;  %vm155_vm6 = vmand %vm91_vm14, %vm123_vm15  ;;  %vm90_vm3 = vcmp.ge.s32.totalorder %v58_v5, 0  ;;  %vm122_vm7 = vcmp.lt.s32.totalorder %v58_v5, 2 }
  0x30   :  { %364 = vmatpush3.msk.msra.mxu0 %vm155_vm6, %v420_v20  ;;  %vm170_vm10 = vmand %vm106_vm2, %vm138_vm5  ;;  %vm105_vm9 = vcmp.ge.s32.totalorder %v73_v6, 0  ;;  %vm137_vm11 = vcmp.lt.s32.totalorder %v73_v6, 2 }
  0x31   :  { %365 = vmatprep.subr.msk.mxu0 %vm170_vm10, %v420_v20  ;;  %vm154_vm0 = vmand %vm90_vm3, %vm122_vm7 }
  0x32   :  { %366 = vmatpush3.msk.msra.mxu0 %vm154_vm0, %v420_v20  ;;  %vm169_vm12 = vmand %vm105_vm9, %vm137_vm11 }
  0x33   :  { %367 = vmatprep.subr.msk.mxu0 %vm169_vm12, %v420_v20  ;;  %vm153_vm1 = vmand %vm89_vm8, %vm121_vm13 }
  0x34   :  { %368 = vmatpush3.msk.msra.mxu0 %vm153_vm1, %v420_v20 }
  0x35   :  { %284 = vmatmul.mubr.f32.vlgmr.msra.gmra.mxu0 %v217_v1 }
  0xf5   :  { %v369_v4 = vpop.f32.mrf.mxu0 }
  0xf7   :  { %v370_v7 = vpop.f32.mrf.mxu0 }
  0xf8   :  { %v371_v8 = vadd.f32 %v370_v7, %v369_v4 }
  0xfa   :  { %289 = vst [vmem:[#allocation5] sm:$0xff] %v371_v8 }
  0xfb   :  { %406 = shalt.err (!%p403_p9)
}
  0xfc   :  { %299 = dma.vmem_to_hbm [thread:$0]  %s297_s11, 128, %s570_s1, [#allocation4]  }
  0xfd   :  { %417 = dma.done.wait [#allocation4], 128  }
  0xfe   :  { %418 = vsyncadd [#allocation4], 4294967168 }
  0xff   :  { %303 = vsyncpa [#allocation3], 1 }
 0x100   :  { %304 = vsyncpa [#allocation4], 1 }

</bundles_post_ra>
